<compile_context>
chip_gen: v6e
topology: v6e:2x2x1
jax: 0.10.0
libtpu: 0.0.40
codegen_flags: <defaults>
</compile_context>

<pallas_src>
import functools

import jax
import jax.numpy as jnp
from jax import lax
from jax.experimental import pallas as pl
from jax.experimental.pallas import tpu as pltpu


def _dual_inter_action_kernel(x1_ref, x2_ref, w1_ref, w2_ref, b1_ref, b2_ref,
                              out_ref, *, width):
    # x1_ref, x2_ref : (1, C, H*W)   channels-first, spatial flattened (lane-dense)
    # w1_ref         : (C, 9*2C)     conv1 weights (BN1 scale folded), order (dy, dx, cin)
    # w2_ref         : (C, 9*C)      conv2 weights (BN2 scale folded)
    # b1_ref, b2_ref : (C, 1)        folded BN biases (f32)
    # out_ref        : (1, C, H*W)
    _, cout, np_ = out_ref.shape
    w_ = width
    pad = w_ + 1                       # covers the +/-1 row shift of the 3x3 window
    mxu_dt = w1_ref.dtype              # bf16 (default) or f32 (exact path)

    # Column-wrap masks (in output-lane coordinates).  In the flat stride-W layout a
    # dx=0 tap at w==0 (resp. dx=2 tap at w==W-1) would read the adjacent row; those
    # lanes must contribute zero (they are the zero padding of the conv).
    col = lax.broadcasted_iota(jnp.int32, (1, np_), 1) % w_
    keep_left = col != 0               # applied to dx == 0 taps
    keep_right = col != (w_ - 1)       # applied to dx == 2 taps

    def conv3x3(x_flat, w_mat, cin):
        # x_flat: (cin, H*W) in MXU dtype; w_mat: (cout, 9*cin) in MXU dtype.
        zeros = jnp.zeros((cin, pad), mxu_dt)
        xe = jnp.concatenate([zeros, x_flat, zeros], axis=1)   # (cin, H*W + 2*(W+1))
        acc = jnp.zeros((cout, np_), jnp.float32)
        for dy in range(3):                                    # split-K over dy: 3 matmuls
            slabs = []
            for dx in range(3):
                start = pad + (dy - 1) * w_ + (dx - 1)         # static lane shift
                slab = xe[:, start:start + np_]
                if dx == 0:
                    slab = jnp.where(keep_left, slab, jnp.zeros_like(slab))
                elif dx == 2:
                    slab = jnp.where(keep_right, slab, jnp.zeros_like(slab))
                slabs.append(slab)
            stack = jnp.concatenate(slabs, axis=0)             # (3*cin, H*W) sublane stack
            w_dy = w_mat[:, dy * 3 * cin:(dy + 1) * 3 * cin]   # (cout, 3*cin)
            acc = acc + lax.dot_general(
                w_dy, stack,
                dimension_numbers=(((1,), (0,)), ((), ())),
                preferred_element_type=jnp.float32)            # lane-dense (cout, H*W)
        return acc

    x1 = x1_ref[0]                                             # (C, H*W), model dtype
    x2 = x2_ref[0]
    # torch.cat([x1, x2], dim=1) == sublane (channel-axis) stack; no lane repacking.
    xin = jnp.concatenate([x1, x2], axis=0).astype(mxu_dt)     # (2C, H*W)

    # conv1 + folded BN1 + ReLU (f32 accumulation).
    a1 = conv3x3(xin, w1_ref[...], 2 * cout) + b1_ref[...]
    a1 = jnp.maximum(a1, 0.0)

    # conv2 + folded BN2 — activation stays in registers/VMEM values, no scratch round-trip.
    a2 = conv3x3(a1.astype(mxu_dt), w2_ref[...], cout) + b2_ref[...]

    # Residual (exact, model dtype) + ReLU, stored lane-dense.
    out = jnp.maximum(a2 + x1.astype(jnp.float32), 0.0)
    out_ref[0] = out.astype(out_ref.dtype)


def dual_inter_action(x1, x2, w1_mat, w2_mat, b1, b2, *, mxu_dtype=jnp.bfloat16):
    """x1, x2: (N, C, H, W) NCHW (PyTorch layout). Returns (N, C, H, W)."""
    n, c, h, w = x1.shape
    np_ = h * w
    dt = x1.dtype

    # Collapsing / splitting the two contiguous minor dims is free layout plumbing.
    x1f = x1.reshape(n, c, np_)
    x2f = x2.reshape(n, c, np_)
    w1m = w1_mat.astype(mxu_dtype)
    w2m = w2_mat.astype(mxu_dtype)
    b1m = b1.astype(jnp.float32)
    b2m = b2.astype(jnp.float32)

    kernel = functools.partial(_dual_inter_action_kernel, width=w)
    out_flat = pl.pallas_call(
        kernel,
        out_shape=jax.ShapeDtypeStruct((n, c, np_), dt),
        grid=(n,),
        in_specs=[
            pl.BlockSpec((1, c, np_), lambda i: (i, 0, 0)),
            pl.BlockSpec((1, c, np_), lambda i: (i, 0, 0)),
            pl.BlockSpec((c, 18 * c), lambda i: (0, 0)),
            pl.BlockSpec((c, 9 * c), lambda i: (0, 0)),
            pl.BlockSpec((c, 1), lambda i: (0, 0)),
            pl.BlockSpec((c, 1), lambda i: (0, 0)),
        ],
        out_specs=pl.BlockSpec((1, c, np_), lambda i: (i, 0, 0)),
        compiler_params=pltpu.CompilerParams(
            dimension_semantics=("parallel",),
            # Raise over v5e/v6e scoped defaults, but keep headroom under v7x's
            # 64 MiB physical VMEM per TensorCore.
            vmem_limit_bytes=48 * 1024 * 1024),
    )(x1f, x2f, w1m, w2m, b1m, b2m)
    return out_flat.reshape(n, c, h, w)


def _fold_bn_matrix(w_oihw, gamma, beta, mean, var, eps):
    """Fold inference BatchNorm into (Cout, 9*Cin) weight matrix + (Cout, 1) bias.

    Weight row order is (dy, dx, cin) — must match the kernel's per-dy slab stack.
    """
    scale = gamma / jnp.sqrt(var + eps)                          # (Cout,)
    cout, cin = w_oihw.shape[0], w_oihw.shape[1]
    w_mat = jnp.transpose(w_oihw, (0, 2, 3, 1)).reshape(cout, 9 * cin)
    w_mat = w_mat * scale[:, None]
    bias = (beta - mean * scale).reshape(cout, 1)
    return w_mat, bias


def _reference(x1, x2, w1_oihw, w2_oihw, bn1, bn2, eps):
    """Pure-JAX reference matching the PyTorch module (inference-mode BN)."""
    def conv(x, w):
        return lax.conv_general_dilated(
            x, w, window_strides=(1, 1), padding=((1, 1), (1, 1)),
            dimension_numbers=("NCHW", "OIHW", "NCHW"))

    def bn(x, p):
        g, b, m, v = p
        inv = g / jnp.sqrt(v + eps)
        return (x - m[None, :, None, None]) * inv[None, :, None, None] \
            + b[None, :, None, None]

    x = jnp.concatenate([x1, x2], axis=1)
    out = jax.nn.relu(bn(conv(x, w1_oihw), bn1))
    out = bn(conv(out, w2_oihw), bn2)
    return jax.nn.relu(out + x1)


if __name__ == "__main__":
    N, C, H, W = 2, 4, 16, 16
    eps = 1e-5

    key = jax.random.PRNGKey(0)
    k = jax.random.split(key, 12)

    x1 = jax.random.normal(k[0], (N, C, H, W), jnp.float32)
    x2 = jax.random.normal(k[1], (N, C, H, W), jnp.float32)

    # conv3x3 weights (bias-free, as in the ResNet conv3x3 helper), OIHW.
    conv1_w = 0.1 * jax.random.normal(k[2], (C, 2 * C, 3, 3), jnp.float32)
    conv2_w = 0.1 * jax.random.normal(k[3], (C, C, 3, 3), jnp.float32)

    # BatchNorm parameters / running stats (inference-mode BN).
    bn1 = (1.0 + 0.1 * jax.random.normal(k[4], (C,), jnp.float32),    # gamma
           0.1 * jax.random.normal(k[5], (C,), jnp.float32),          # beta
           0.1 * jax.random.normal(k[6], (C,), jnp.float32),          # running_mean
           1.0 + 0.1 * jax.random.uniform(k[7], (C,), jnp.float32))   # running_var
    bn2 = (1.0 + 0.1 * jax.random.normal(k[8], (C,), jnp.float32),
           0.1 * jax.random.normal(k[9], (C,), jnp.float32),
           0.1 * jax.random.normal(k[10], (C,), jnp.float32),
           1.0 + 0.1 * jax.random.uniform(k[11], (C,), jnp.float32))

    w1_mat, b1 = _fold_bn_matrix(conv1_w, *bn1, eps)
    w2_mat, b2 = _fold_bn_matrix(conv2_w, *bn2, eps)

    ref = jax.block_until_ready(_reference(x1, x2, conv1_w, conv2_w, bn1, bn2, eps))

    # Exact path (f32 MXU operands): validates indexing / masks / weight layout tightly.
    out_f32 = jax.block_until_ready(
        dual_inter_action(x1, x2, w1_mat, w2_mat, b1, b2, mxu_dtype=jnp.float32))
    assert out_f32.shape == (N, C, H, W)
    assert jnp.allclose(out_f32, ref, atol=2e-4, rtol=2e-4), \
        f"f32 path max abs err {jnp.max(jnp.abs(out_f32 - ref))}"

    # Default fast path (bf16 MXU operands, f32 accumulation): looser tolerance.
    out_bf16 = jax.block_until_ready(dual_inter_action(x1, x2, w1_mat, w2_mat, b1, b2))
    assert out_bf16.shape == (N, C, H, W)
    assert jnp.allclose(out_bf16, ref, atol=1e-1, rtol=1e-1), \
        f"bf16 path max abs err {jnp.max(jnp.abs(out_bf16 - ref))}"

    print("KERNEL_OK")
</pallas_src>

<mosaic_0001>
module attributes {stable_mosaic.version = 11 : i64} {
  func.func @_dual_inter_action_kernel(%arg0: i32, %arg1: memref<1x4x256xf32, #tpu.memory_space<vmem>>, %arg2: memref<1x4x256xf32, #tpu.memory_space<vmem>>, %arg3: memref<4x72xf32, #tpu.memory_space<vmem>>, %arg4: memref<4x36xf32, #tpu.memory_space<vmem>>, %arg5: memref<4x1xf32, #tpu.memory_space<vmem>>, %arg6: memref<4x1xf32, #tpu.memory_space<vmem>>, %arg7: memref<1x4x256xf32, #tpu.memory_space<vmem>>) attributes {dimension_semantics = [#tpu.dimension_semantics<parallel>], iteration_bounds = array<i64: 2>, scalar_prefetch = 0 : i64, scratch_operands = 0 : i64, tpu.core_type = #tpu.core_type<tc>, window_params = [{transform_indices = @transform_0, window_bounds = array<i64: 1, 4, 256>}, {transform_indices = @transform_1, window_bounds = array<i64: 1, 4, 256>}, {pipeline_mode = #tpu.pipeline_mode<synchronous>, transform_indices = @transform_2, window_bounds = array<i64: 4, 72>}, {pipeline_mode = #tpu.pipeline_mode<synchronous>, transform_indices = @transform_3, window_bounds = array<i64: 4, 36>}, {pipeline_mode = #tpu.pipeline_mode<synchronous>, transform_indices = @transform_4, window_bounds = array<i64: 4, 1>}, {pipeline_mode = #tpu.pipeline_mode<synchronous>, transform_indices = @transform_5, window_bounds = array<i64: 4, 1>}, {transform_indices = @transform_6, window_bounds = array<i64: 1, 4, 256>}]} {
    %0 = tpu.iota {dimensions = array<i32: 1>} : vector<1x256xi32>
    %c16_i32 = arith.constant 16 : i32
    %c0_i32 = arith.constant 0 : i32
    %1 = arith.cmpi eq, %c16_i32, %c0_i32 : i32
    %c1_i32 = arith.constant 1 : i32
    %2 = arith.select %1, %c1_i32, %c16_i32 : i32
    %3 = vector.broadcast %2 : i32 to vector<1x256xi32>
    %4 = arith.remsi %0, %3 : vector<1x256xi32>
    %c0_i32_0 = arith.constant 0 : i32
    %5 = vector.broadcast %c0_i32_0 : i32 to vector<1x256xi32>
    %6 = arith.cmpi ne, %4, %5 : vector<1x256xi32>
    %c0_i32_1 = arith.constant 0 : i32
    %7 = vector.broadcast %c0_i32_1 : i32 to vector<1x256xi32>
    %8 = arith.cmpi slt, %4, %7 : vector<1x256xi32>
    %c0_i32_2 = arith.constant 0 : i32
    %9 = arith.cmpi slt, %2, %c0_i32_2 : i32
    %10 = vector.broadcast %9 : i1 to vector<1x256xi1>
    %11 = vector.broadcast %10 : vector<1x256xi1> to vector<1x256xi1>
    %12 = arith.xori %8, %11 : vector<1x256xi1>
    %13 = arith.andi %12, %6 : vector<1x256xi1>
    %14 = vector.broadcast %2 : i32 to vector<1x256xi32>
    %15 = arith.addi %4, %14 : vector<1x256xi32>
    %16 = arith.select %13, %15, %4 : vector<1x256xi1>, vector<1x256xi32>
    %c0_i32_3 = arith.constant 0 : i32
    %17 = vector.broadcast %c0_i32_3 : i32 to vector<1x256xi32>
    %18 = arith.cmpi ne, %16, %17 : vector<1x256xi32>
    %c15_i32 = arith.constant 15 : i32
    %19 = vector.broadcast %c15_i32 : i32 to vector<1x256xi32>
    %20 = arith.cmpi ne, %16, %19 : vector<1x256xi32>
    %c0 = arith.constant 0 : index
    %c0_4 = arith.constant 0 : index
    %c0_5 = arith.constant 0 : index
    %21 = vector.load %arg1[%c0, %c0_4, %c0_5] : memref<1x4x256xf32, #tpu.memory_space<vmem>>, vector<1x4x256xf32>
    %22 = vector.shape_cast %21 : vector<1x4x256xf32> to vector<4x256xf32>
    %c0_6 = arith.constant 0 : index
    %c0_7 = arith.constant 0 : index
    %c0_8 = arith.constant 0 : index
    %23 = vector.load %arg2[%c0_6, %c0_7, %c0_8] : memref<1x4x256xf32, #tpu.memory_space<vmem>>, vector<1x4x256xf32>
    %24 = vector.shape_cast %23 : vector<1x4x256xf32> to vector<4x256xf32>
    %25 = tpu.concatenate %22, %24 in 0 : vector<4x256xf32>, vector<4x256xf32> -> vector<8x256xf32>
    %c0_9 = arith.constant 0 : index
    %c0_10 = arith.constant 0 : index
    %26 = vector.load %arg3[%c0_9, %c0_10] : memref<4x72xf32, #tpu.memory_space<vmem>>, vector<4x72xf32>
    %cst = arith.constant 0.000000e+00 : f32
    %27 = vector.broadcast %cst : f32 to vector<8x17xf32>
    %28 = tpu.concatenate %27, %25, %27 in 1 : vector<8x17xf32>, vector<8x256xf32>, vector<8x17xf32> -> vector<8x290xf32>
    %cst_11 = arith.constant 0.000000e+00 : f32
    %29 = vector.broadcast %cst_11 : f32 to vector<4x256xf32>
    %30 = vector.extract_strided_slice %28 {offsets = [0, 0], sizes = [8, 256], strides = [1, 1]} : vector<8x290xf32> to vector<8x256xf32>
    %cst_12 = arith.constant 0.000000e+00 : f32
    %31 = vector.broadcast %cst_12 : f32 to vector<8x256xf32>
    %32 = vector.shape_cast %18 : vector<1x256xi1> to vector<1x256xi1>
    %33 = vector.broadcast %32 : vector<1x256xi1> to vector<8x256xi1>
    %34 = arith.select %33, %30, %31 : vector<8x256xi1>, vector<8x256xf32>
    %35 = vector.extract_strided_slice %28 {offsets = [0, 1], sizes = [8, 256], strides = [1, 1]} : vector<8x290xf32> to vector<8x256xf32>
    %36 = vector.extract_strided_slice %28 {offsets = [0, 2], sizes = [8, 256], strides = [1, 1]} : vector<8x290xf32> to vector<8x256xf32>
    %cst_13 = arith.constant 0.000000e+00 : f32
    %37 = vector.broadcast %cst_13 : f32 to vector<8x256xf32>
    %38 = vector.shape_cast %20 : vector<1x256xi1> to vector<1x256xi1>
    %39 = vector.broadcast %38 : vector<1x256xi1> to vector<8x256xi1>
    %40 = arith.select %39, %36, %37 : vector<8x256xi1>, vector<8x256xf32>
    %41 = tpu.concatenate %34, %35, %40 in 0 : vector<8x256xf32>, vector<8x256xf32>, vector<8x256xf32> -> vector<24x256xf32>
    %42 = vector.extract_strided_slice %26 {offsets = [0, 0], sizes = [4, 24], strides = [1, 1]} : vector<4x72xf32> to vector<4x24xf32>
    %cst_14 = arith.constant dense<0.000000e+00> : vector<4x256xf32>
    %43 = tpu.matmul %42, %41, %cst_14 {dimension_numbers = #tpu.dot_dimension_numbers<[1], [0], [0], [1], [0, 0, 1, 1], [], []>} : vector<4x24xf32>, vector<24x256xf32>, vector<4x256xf32> -> vector<4x256xf32>
    %44 = arith.addf %29, %43 : vector<4x256xf32>
    %45 = vector.extract_strided_slice %28 {offsets = [0, 16], sizes = [8, 256], strides = [1, 1]} : vector<8x290xf32> to vector<8x256xf32>
    %cst_15 = arith.constant 0.000000e+00 : f32
    %46 = vector.broadcast %cst_15 : f32 to vector<8x256xf32>
    %47 = vector.shape_cast %18 : vector<1x256xi1> to vector<1x256xi1>
    %48 = vector.broadcast %47 : vector<1x256xi1> to vector<8x256xi1>
    %49 = arith.select %48, %45, %46 : vector<8x256xi1>, vector<8x256xf32>
    %50 = vector.extract_strided_slice %28 {offsets = [0, 17], sizes = [8, 256], strides = [1, 1]} : vector<8x290xf32> to vector<8x256xf32>
    %51 = vector.extract_strided_slice %28 {offsets = [0, 18], sizes = [8, 256], strides = [1, 1]} : vector<8x290xf32> to vector<8x256xf32>
    %cst_16 = arith.constant 0.000000e+00 : f32
    %52 = vector.broadcast %cst_16 : f32 to vector<8x256xf32>
    %53 = vector.shape_cast %20 : vector<1x256xi1> to vector<1x256xi1>
    %54 = vector.broadcast %53 : vector<1x256xi1> to vector<8x256xi1>
    %55 = arith.select %54, %51, %52 : vector<8x256xi1>, vector<8x256xf32>
    %56 = tpu.concatenate %49, %50, %55 in 0 : vector<8x256xf32>, vector<8x256xf32>, vector<8x256xf32> -> vector<24x256xf32>
    %57 = vector.extract_strided_slice %26 {offsets = [0, 24], sizes = [4, 24], strides = [1, 1]} : vector<4x72xf32> to vector<4x24xf32>
    %cst_17 = arith.constant dense<0.000000e+00> : vector<4x256xf32>
    %58 = tpu.matmul %57, %56, %cst_17 {dimension_numbers = #tpu.dot_dimension_numbers<[1], [0], [0], [1], [0, 0, 1, 1], [], []>} : vector<4x24xf32>, vector<24x256xf32>, vector<4x256xf32> -> vector<4x256xf32>
    %59 = arith.addf %44, %58 : vector<4x256xf32>
    %60 = vector.extract_strided_slice %28 {offsets = [0, 32], sizes = [8, 256], strides = [1, 1]} : vector<8x290xf32> to vector<8x256xf32>
    %cst_18 = arith.constant 0.000000e+00 : f32
    %61 = vector.broadcast %cst_18 : f32 to vector<8x256xf32>
    %62 = vector.shape_cast %18 : vector<1x256xi1> to vector<1x256xi1>
    %63 = vector.broadcast %62 : vector<1x256xi1> to vector<8x256xi1>
    %64 = arith.select %63, %60, %61 : vector<8x256xi1>, vector<8x256xf32>
    %65 = vector.extract_strided_slice %28 {offsets = [0, 33], sizes = [8, 256], strides = [1, 1]} : vector<8x290xf32> to vector<8x256xf32>
    %66 = vector.extract_strided_slice %28 {offsets = [0, 34], sizes = [8, 256], strides = [1, 1]} : vector<8x290xf32> to vector<8x256xf32>
    %cst_19 = arith.constant 0.000000e+00 : f32
    %67 = vector.broadcast %cst_19 : f32 to vector<8x256xf32>
    %68 = vector.shape_cast %20 : vector<1x256xi1> to vector<1x256xi1>
    %69 = vector.broadcast %68 : vector<1x256xi1> to vector<8x256xi1>
    %70 = arith.select %69, %66, %67 : vector<8x256xi1>, vector<8x256xf32>
    %71 = tpu.concatenate %64, %65, %70 in 0 : vector<8x256xf32>, vector<8x256xf32>, vector<8x256xf32> -> vector<24x256xf32>
    %72 = vector.extract_strided_slice %26 {offsets = [0, 48], sizes = [4, 24], strides = [1, 1]} : vector<4x72xf32> to vector<4x24xf32>
    %cst_20 = arith.constant dense<0.000000e+00> : vector<4x256xf32>
    %73 = tpu.matmul %72, %71, %cst_20 {dimension_numbers = #tpu.dot_dimension_numbers<[1], [0], [0], [1], [0, 0, 1, 1], [], []>} : vector<4x24xf32>, vector<24x256xf32>, vector<4x256xf32> -> vector<4x256xf32>
    %74 = arith.addf %59, %73 : vector<4x256xf32>
    %c0_21 = arith.constant 0 : index
    %c0_22 = arith.constant 0 : index
    %75 = vector.load %arg5[%c0_21, %c0_22] : memref<4x1xf32, #tpu.memory_space<vmem>>, vector<4x1xf32>
    %76 = vector.broadcast %75 : vector<4x1xf32> to vector<4x256xf32>
    %77 = arith.addf %74, %76 : vector<4x256xf32>
    %cst_23 = arith.constant 0.000000e+00 : f32
    %78 = vector.broadcast %cst_23 : f32 to vector<4x256xf32>
    %79 = arith.maximumf %77, %78 : vector<4x256xf32>
    %c0_24 = arith.constant 0 : index
    %c0_25 = arith.constant 0 : index
    %80 = vector.load %arg4[%c0_24, %c0_25] : memref<4x36xf32, #tpu.memory_space<vmem>>, vector<4x36xf32>
    %cst_26 = arith.constant 0.000000e+00 : f32
    %81 = vector.broadcast %cst_26 : f32 to vector<4x17xf32>
    %82 = tpu.concatenate %81, %79, %81 in 1 : vector<4x17xf32>, vector<4x256xf32>, vector<4x17xf32> -> vector<4x290xf32>
    %cst_27 = arith.constant 0.000000e+00 : f32
    %83 = vector.broadcast %cst_27 : f32 to vector<4x256xf32>
    %84 = vector.extract_strided_slice %82 {offsets = [0, 0], sizes = [4, 256], strides = [1, 1]} : vector<4x290xf32> to vector<4x256xf32>
    %cst_28 = arith.constant 0.000000e+00 : f32
    %85 = vector.broadcast %cst_28 : f32 to vector<4x256xf32>
    %86 = vector.shape_cast %18 : vector<1x256xi1> to vector<1x256xi1>
    %87 = vector.broadcast %86 : vector<1x256xi1> to vector<4x256xi1>
    %88 = arith.select %87, %84, %85 : vector<4x256xi1>, vector<4x256xf32>
    %89 = vector.extract_strided_slice %82 {offsets = [0, 1], sizes = [4, 256], strides = [1, 1]} : vector<4x290xf32> to vector<4x256xf32>
    %90 = vector.extract_strided_slice %82 {offsets = [0, 2], sizes = [4, 256], strides = [1, 1]} : vector<4x290xf32> to vector<4x256xf32>
    %cst_29 = arith.constant 0.000000e+00 : f32
    %91 = vector.broadcast %cst_29 : f32 to vector<4x256xf32>
    %92 = vector.shape_cast %20 : vector<1x256xi1> to vector<1x256xi1>
    %93 = vector.broadcast %92 : vector<1x256xi1> to vector<4x256xi1>
    %94 = arith.select %93, %90, %91 : vector<4x256xi1>, vector<4x256xf32>
    %95 = tpu.concatenate %88, %89, %94 in 0 : vector<4x256xf32>, vector<4x256xf32>, vector<4x256xf32> -> vector<12x256xf32>
    %96 = vector.extract_strided_slice %80 {offsets = [0, 0], sizes = [4, 12], strides = [1, 1]} : vector<4x36xf32> to vector<4x12xf32>
    %cst_30 = arith.constant dense<0.000000e+00> : vector<4x256xf32>
    %97 = tpu.matmul %96, %95, %cst_30 {dimension_numbers = #tpu.dot_dimension_numbers<[1], [0], [0], [1], [0, 0, 1, 1], [], []>} : vector<4x12xf32>, vector<12x256xf32>, vector<4x256xf32> -> vector<4x256xf32>
    %98 = arith.addf %83, %97 : vector<4x256xf32>
    %99 = vector.extract_strided_slice %82 {offsets = [0, 16], sizes = [4, 256], strides = [1, 1]} : vector<4x290xf32> to vector<4x256xf32>
    %cst_31 = arith.constant 0.000000e+00 : f32
    %100 = vector.broadcast %cst_31 : f32 to vector<4x256xf32>
    %101 = vector.shape_cast %18 : vector<1x256xi1> to vector<1x256xi1>
    %102 = vector.broadcast %101 : vector<1x256xi1> to vector<4x256xi1>
    %103 = arith.select %102, %99, %100 : vector<4x256xi1>, vector<4x256xf32>
    %104 = vector.extract_strided_slice %82 {offsets = [0, 17], sizes = [4, 256], strides = [1, 1]} : vector<4x290xf32> to vector<4x256xf32>
    %105 = vector.extract_strided_slice %82 {offsets = [0, 18], sizes = [4, 256], strides = [1, 1]} : vector<4x290xf32> to vector<4x256xf32>
    %cst_32 = arith.constant 0.000000e+00 : f32
    %106 = vector.broadcast %cst_32 : f32 to vector<4x256xf32>
    %107 = vector.shape_cast %20 : vector<1x256xi1> to vector<1x256xi1>
    %108 = vector.broadcast %107 : vector<1x256xi1> to vector<4x256xi1>
    %109 = arith.select %108, %105, %106 : vector<4x256xi1>, vector<4x256xf32>
    %110 = tpu.concatenate %103, %104, %109 in 0 : vector<4x256xf32>, vector<4x256xf32>, vector<4x256xf32> -> vector<12x256xf32>
    %111 = vector.extract_strided_slice %80 {offsets = [0, 12], sizes = [4, 12], strides = [1, 1]} : vector<4x36xf32> to vector<4x12xf32>
    %cst_33 = arith.constant dense<0.000000e+00> : vector<4x256xf32>
    %112 = tpu.matmul %111, %110, %cst_33 {dimension_numbers = #tpu.dot_dimension_numbers<[1], [0], [0], [1], [0, 0, 1, 1], [], []>} : vector<4x12xf32>, vector<12x256xf32>, vector<4x256xf32> -> vector<4x256xf32>
    %113 = arith.addf %98, %112 : vector<4x256xf32>
    %114 = vector.extract_strided_slice %82 {offsets = [0, 32], sizes = [4, 256], strides = [1, 1]} : vector<4x290xf32> to vector<4x256xf32>
    %cst_34 = arith.constant 0.000000e+00 : f32
    %115 = vector.broadcast %cst_34 : f32 to vector<4x256xf32>
    %116 = vector.shape_cast %18 : vector<1x256xi1> to vector<1x256xi1>
    %117 = vector.broadcast %116 : vector<1x256xi1> to vector<4x256xi1>
    %118 = arith.select %117, %114, %115 : vector<4x256xi1>, vector<4x256xf32>
    %119 = vector.extract_strided_slice %82 {offsets = [0, 33], sizes = [4, 256], strides = [1, 1]} : vector<4x290xf32> to vector<4x256xf32>
    %120 = vector.extract_strided_slice %82 {offsets = [0, 34], sizes = [4, 256], strides = [1, 1]} : vector<4x290xf32> to vector<4x256xf32>
    %cst_35 = arith.constant 0.000000e+00 : f32
    %121 = vector.broadcast %cst_35 : f32 to vector<4x256xf32>
    %122 = vector.shape_cast %20 : vector<1x256xi1> to vector<1x256xi1>
    %123 = vector.broadcast %122 : vector<1x256xi1> to vector<4x256xi1>
    %124 = arith.select %123, %120, %121 : vector<4x256xi1>, vector<4x256xf32>
    %125 = tpu.concatenate %118, %119, %124 in 0 : vector<4x256xf32>, vector<4x256xf32>, vector<4x256xf32> -> vector<12x256xf32>
    %126 = vector.extract_strided_slice %80 {offsets = [0, 24], sizes = [4, 12], strides = [1, 1]} : vector<4x36xf32> to vector<4x12xf32>
    %cst_36 = arith.constant dense<0.000000e+00> : vector<4x256xf32>
    %127 = tpu.matmul %126, %125, %cst_36 {dimension_numbers = #tpu.dot_dimension_numbers<[1], [0], [0], [1], [0, 0, 1, 1], [], []>} : vector<4x12xf32>, vector<12x256xf32>, vector<4x256xf32> -> vector<4x256xf32>
    %128 = arith.addf %113, %127 : vector<4x256xf32>
    %c0_37 = arith.constant 0 : index
    %c0_38 = arith.constant 0 : index
    %129 = vector.load %arg6[%c0_37, %c0_38] : memref<4x1xf32, #tpu.memory_space<vmem>>, vector<4x1xf32>
    %130 = vector.broadcast %129 : vector<4x1xf32> to vector<4x256xf32>
    %131 = arith.addf %128, %130 : vector<4x256xf32>
    %132 = arith.addf %131, %22 : vector<4x256xf32>
    %cst_39 = arith.constant 0.000000e+00 : f32
    %133 = vector.broadcast %cst_39 : f32 to vector<4x256xf32>
    %134 = arith.maximumf %132, %133 : vector<4x256xf32>
    %c0_40 = arith.constant 0 : index
    %c0_41 = arith.constant 0 : index
    %c0_42 = arith.constant 0 : index
    %135 = vector.load %arg7[%c0_40, %c0_41, %c0_42] : memref<1x4x256xf32, #tpu.memory_space<vmem>>, vector<1x4x256xf32>
    %136 = vector.shape_cast %135 : vector<1x4x256xf32> to vector<4x256xf32>
    %137 = vector.shape_cast %134 : vector<4x256xf32> to vector<1x4x256xf32>
    tpu.vector_store %arg7[%c0_40, %c0_41, %c0_42], %137 {strides = array<i32>} : memref<1x4x256xf32, #tpu.memory_space<vmem>>, vector<1x4x256xf32>,
    return
  }
  func.func @transform_0(%arg0: i32) -> (i32, i32, i32) {
    %c0_i32 = arith.constant 0 : i32
    %c0_i32_0 = arith.constant 0 : i32
    %c0_i32_1 = arith.constant 0 : i32
    return %arg0, %c0_i32, %c0_i32_0 : i32, i32, i32
  }
  func.func @transform_1(%arg0: i32) -> (i32, i32, i32) {
    %c0_i32 = arith.constant 0 : i32
    %c0_i32_0 = arith.constant 0 : i32
    %c0_i32_1 = arith.constant 0 : i32
    return %arg0, %c0_i32, %c0_i32_0 : i32, i32, i32
  }
  func.func @transform_2(%arg0: i32) -> (i32, i32) {
    %c0_i32 = arith.constant 0 : i32
    %c0_i32_0 = arith.constant 0 : i32
    %c0_i32_1 = arith.constant 0 : i32
    return %c0_i32, %c0_i32_0 : i32, i32
  }
  func.func @transform_3(%arg0: i32) -> (i32, i32) {
    %c0_i32 = arith.constant 0 : i32
    %c0_i32_0 = arith.constant 0 : i32
    %c0_i32_1 = arith.constant 0 : i32
    return %c0_i32, %c0_i32_0 : i32, i32
  }
  func.func @transform_4(%arg0: i32) -> (i32, i32) {
    %c0_i32 = arith.constant 0 : i32
    %c0_i32_0 = arith.constant 0 : i32
    %c0_i32_1 = arith.constant 0 : i32
    return %c0_i32, %c0_i32_0 : i32, i32
  }
  func.func @transform_5(%arg0: i32) -> (i32, i32) {
    %c0_i32 = arith.constant 0 : i32
    %c0_i32_0 = arith.constant 0 : i32
    %c0_i32_1 = arith.constant 0 : i32
    return %c0_i32, %c0_i32_0 : i32, i32
  }
  func.func @transform_6(%arg0: i32) -> (i32, i32, i32) {
    %c0_i32 = arith.constant 0 : i32
    %c0_i32_0 = arith.constant 0 : i32
    %c0_i32_1 = arith.constant 0 : i32
    return %arg0, %c0_i32, %c0_i32_0 : i32, i32, i32
  }
}

</mosaic_0001>

<bundles_post_ra>
// kernel: tpu_custom_call.1
= control target key start
LH: loop header
LB: loop body
LE: loop exit
PB: predicated region body
PF: predicated region fallthrough
CT: control target
= control target key end

     0   :  { %11 = vsyncpa [#allocation3], 0  ;;  %s1939_s0 = inlined_call_operand.hbm [shape: f32[2,4,256], index: 0, kind: input, shape index: {}]   ;;  %s1940_s1 = inlined_call_operand.hbm [shape: f32[2,4,256], index: 1, kind: input, shape index: {}]   ;;  %s1941_s2 = inlined_call_operand.vmem [shape: f32[4,72], index: 2, kind: input, shape index: {}]   ;;  %s1942_s3 = inlined_call_operand.vmem [shape: f32[4,36], index: 3, kind: input, shape index: {}]   ;;  %s1943_s4 = inlined_call_operand.vmem [shape: f32[4,1], index: 4, kind: input, shape index: {}]   ;;  %s1944_s5 = inlined_call_operand.vmem [shape: f32[4,1], index: 5, kind: input, shape index: {}]   ;;  %s1945_s6 = inlined_call_operand.hbm [shape: f32[2,4,256], index: 6, kind: output, shape index: {}]  }
   0x1   :  { %13 = vsyncpa [#allocation3 + $0x1], 0 }
   0x2   :  { %14 = vsyncpa [#allocation6], 0 }
   0x3   :  { %16 = vsyncpa [#allocation6 + $0x1], 0 }
   0x4   :  { %17 = vsyncpa [#allocation4], 0 }
   0x5   :  { %19 = vsyncpa [#allocation4 + $0x1], 0  ;;  %s1486_s21 = smov 0   ;;  %s1488_s22 = smov 0  }
   0x6   :  { %s1490_s23 = smov 0   ;;  %s1492_s24 = smov 0  }
   0x7 LB: > { %s1507_s25 = sadd.s32 4294967295, %s1432_s24   ;;  %s1195_s26 = sadd.s32 4294967294, %s1432_s24   ;;  %s1432_s24 = sphi %s1492_s24, %s1974_s24   ;;  %s1428_s23 = sphi %s1490_s23, %s1973_s23   ;;  %s1424_s22 = sphi %s1488_s22, %s1972_s22   ;;  %s1420_s21 = sphi %s1486_s21, %s1971_s21  }
   0x8   : > { %s1511_s27 = sadd.s32 1, %s1432_s24   ;;  %s32_s28 = sadd.s32 1, %s1428_s23 }
   0x9   : > { %s29_s29 = ssub.s32 %s1432_s24, %s1511_s27  ;;  %p39_p0 = scmp.ne.s32.totalorder %s1428_s23, %s1424_s22 }
   0xa   : > { %p30_p1 = scmp.eq.s32.totalorder %s29_s29, 0  ;;  %p40_p2 = scmp.eq.s32.totalorder %s1432_s24, 0 }
   0xb   : > { %p45_p3 = scmp.ne.s32.totalorder %s1424_s22, %s1420_s21  ;;  %p46_p4 = scmp.eq.s32.totalorder %s1507_s25, 0 }
   0xc   : > { %s1523_s30 = scalar_select %p30_p1, %s1428_s23, %s32_s28  }
   0xd   : > { %p1525_p5 = por %p40_p2, %p39_p0  ;;  %p1529_p6 = por %p46_p4, %p45_p3 }
   0xe   : > { %p179_p7 = scmp.eq.s32.totalorder %s1507_s25, 1  ;;  %p185_p8 = scmp.eq.s32.totalorder %s1195_s26, 1 }
   0xf   : > { %s1950_s8 = scalar_select %p1529_p6, 1, 0 }
  0x10   : > { %p1257_p10 = scmp.lt.s32.totalorder %s1432_s24, 2  ;;  %p1536_p11 = por %p179_p7, %p39_p0 }
  0x11   : > { %p1540_p12 = por %p185_p8, %p45_p3  ;;  %s1545_s11 = sand.u32 1, %s1428_s23  }
  0x12   : > { %s1951_s9 = scalar_select %p1536_p11, 1, 0 }
  0x13   : > { %s1952_s10 = scalar_select %p1540_p12, 1, 0 }
  0x14   : > { %s1237_s12 = sshll.u32 %s1432_s24, 7  ;;  %s1946_s13 = sshll.u32 %s1545_s11, 3 }
  0x15   : > { %s1554_s16 = scalar_lea.hbm %s1939_s0, %s1237_s12  ;;  %s221_s17 = scalar_lea.vmem [#allocation2], %s1946_s13 }
  0x16   : > { %s229_s18 = sshll.u32 %s221_s17, 4  ;;  %p1560_p13 = pnand %p1257_p10, %p1525_p5  ;;  %s1564_s18 = int_to_ptr.vmem [resolvable:$true] %s229_s18 }
  0x17   : > { %s218_s20 = scalar_lea.sflag [#allocation3], %s1545_s11  ;;  %s1308_s26 = scalar_lea.hbm %s1554_s16, 128 }
  0x18   : > { %p1309_p2 = scmp.ne.s32.totalorder %s1554_s16, %s1308_s26  ;;  %p1310_p3 = pneg %p1560_p13 }
  0x19   : > { %s1313_s7 = scalar_lea.hbm %s1939_s0, 256  ;;  %p1314_p5 = scmp.lt.s32.totalorder %s1554_s16, %s1939_s0 }
  0x1a   : > { %p1311_p4 = pnand %p1310_p3, %p1309_p2  ;;  %p1315_p8 = scmp.lt.s32.totalorder %s1313_s7, %s1308_s26 }
  0x1c   : > { %p1312_p7 = pneg %p1311_p4  ;;  %p1316_p10 = por %p1315_p8, %p1314_p5 }
  0x1e   : > { %p1317_p9 = pnand %p1316_p10, %p1312_p7 }
  0x20   : > { %1320 = shalt.err (!%p1317_p9)
}
  0x21   : > { %s1321_s17 = scalar_lea.vmem %s1564_s18, 128  ;;  %s1434_s28 = smov [#allocation2]  }
  0x22   : > { %p1322_p0 = scmp.ne.s32.totalorder %s1564_s18, %s1321_s17  ;;  %s1326_s29 = sshll.u32 %s1434_s28, 4  ;;  %s1327_s29 = int_to_ptr.vmem [resolvable:$false] %s1326_s29 }
  0x23   : > { %s1328_s13 = scalar_lea.vmem %s1327_s29, 256  ;;  %p1329_p1 = scmp.lt.s32.totalorder %s1564_s18, %s1327_s29 }
  0x24   : > { %p1324_p2 = pnand %p1322_p0, %p1310_p3  ;;  %p1330_p12 = scmp.lt.s32.totalorder %s1328_s13, %s1321_s17 }
  0x26   : > { %p1325_p4 = pneg %p1324_p2  ;;  %p1331_p11 = por %p1330_p12, %p1329_p1 }
  0x28   : > { %p1332_p5 = pnand %p1331_p11, %p1325_p4 }
  0x2a   : > { %1335 = shalt.err (!%p1332_p5)
}
  0x2b   : > { %1249 = dma.hbm_to_vmem [thread:$0]  (!%p1560_p13), %s1554_s16, 128, %s1564_s18, %s218_s20  }
  0x2c   : > { %p1954_p9 = scmp.lt.s32.totalorder %s1432_s24, 3  ;;  %p1955_p0 = scmp.ge.s32.totalorder %s1432_s24, 1 }
  0x2d   : > { %s1606_s14 = scalar_lea.hbm %s1940_s1, %s1237_s12  ;;  %s1957_s15 = sshll.u32 %s1545_s11, 3 }
  0x2e   : > { %p1597_p7 = pnand %p1955_p0, %p1954_p9  ;;  %s240_s17 = scalar_lea.vmem [#allocation5], %s1957_s15 }
  0x2f   : > { %s248_s28 = sshll.u32 %s240_s17, 4  ;;  %s237_s16 = scalar_lea.sflag [#allocation6], %s1545_s11  ;;  %s249_s28 = int_to_ptr.vmem [resolvable:$true] %s248_s28 }
  0x30   : > { %s1956_s26 = scalar_select %p1597_p7, 1, 0 }
  0x31   : > { %s1336_s18 = scalar_lea.hbm %s1606_s14, 128  ;;  %s1341_s13 = scalar_lea.hbm %s1940_s1, 256 }
  0x32   : > { %p1337_p11 = scmp.ne.s32.totalorder %s1606_s14, %s1336_s18  ;;  %p1342_p8 = scmp.lt.s32.totalorder %s1606_s14, %s1940_s1 }
  0x33   : > { %p1343_p10 = scmp.lt.s32.totalorder %s1341_s13, %s1336_s18 }
  0x34   : > { %p1339_p12 = pnand %p1337_p11, %p1310_p3 }
  0x35   : > { %p1344_p2 = por %p1343_p10, %p1342_p8 }
  0x36   : > { %p1340_p1 = pneg %p1339_p12 }
  0x38   : > { %p1345_p4 = pnand %p1344_p2, %p1340_p1 }
  0x3a   : > { %1348 = shalt.err (!%p1345_p4)
}
  0x3b   : > { %s1349_s15 = scalar_lea.vmem %s249_s28, 128  ;;  %s1435_s11 = smov [#allocation5]  }
  0x3c   : > { %p1350_p5 = scmp.ne.s32.totalorder %s249_s28, %s1349_s15  ;;  %s1354_s17 = sshll.u32 %s1435_s11, 4  ;;  %s1355_s17 = int_to_ptr.vmem [resolvable:$false] %s1354_s17 }
  0x3d   : > { %s1356_s20 = scalar_lea.vmem %s1355_s17, 256  ;;  %p1357_p11 = scmp.lt.s32.totalorder %s249_s28, %s1355_s17 }
  0x3e   : > { %p1352_p9 = pnand %p1350_p5, %p1310_p3  ;;  %p1358_p12 = scmp.lt.s32.totalorder %s1356_s20, %s1349_s15 }
  0x40   : > { %p1353_p0 = pneg %p1352_p9  ;;  %p1359_p6 = por %p1358_p12, %p1357_p11 }
  0x42   : > { %p1360_p7 = pnand %p1359_p6, %p1353_p0 }
  0x44   : > { %1363 = shalt.err (!%p1360_p7)
}
  0x45   : > { %1252 = dma.hbm_to_vmem [thread:$0]  (!%p1560_p13), %s1606_s14, 128, %s249_s28, %s237_s16  }
  0x46   : > { %p1958_p1 = scmp.ne.s32.totalorder %s1956_s26, 0 }
  0x47   : > { %s1632_s18 = sand.u32 (!%p1958_p1), 1, %s1424_s22   ;;  %p1959_p6 = scmp.ne.s32.totalorder (!%p1958_p1), %s1950_s8, 0 }
  0x48   : > { %257 = sbr.rel (%p1958_p1) target bundleno = 1067 (0x42b), region = 44  ;;  %s1635_s29 = sshll.u32 (!%p1958_p1), %s1632_s18, 3 }
  0x49   : > { %s260_s13 = scalar_lea.sflag (!%p1958_p1), [#allocation3], %s1632_s18  ;;  %s263_s12 = scalar_lea.vmem (!%p1958_p1), [#allocation2], %s1635_s29 }
  0x4d   : > { %1407 = dma.done.wait (%p1959_p6), %s260_s13, 128  }
  0x4e   : > { %1409 = vsyncadd (%p1959_p6), %s260_s13, 4294967168  ;;  %s269_s19 = scalar_lea.sflag [#allocation6], %s1632_s18  ;;  %s272_s26 = scalar_lea.vmem [#allocation5], %s1635_s29 }
  0x4f   : > { %1411 = dma.done.wait (%p1959_p6), %s269_s19, 128  }
  0x50   : > { %1413 = vsyncadd (%p1959_p6), %s269_s19, 4294967168  ;;  %v1649_v0 = vld [vmem:[%s263_s12] sm:$0xff]  ;;  %v338_v1 = vld [vmem:[%s272_s26] sm:$0xff]  ;;  %vm345_vm0 = vcmask 1043456   ;;  %s1436_s14 = smov 17   ;;  %s1437_s16 = smov 104   ;;  %v306_v15 = vlaneseq }
  0x51   : > { %v343_v2 = vcombine.low %v338_v1, %v338_v1  ;;  %v1653_v3 = vcombine.high %v1649_v0, %v1649_v0  ;;  %v1664_v6 = vld [vmem:[%s1941_s2] sm:$0xf]  ;;  %vm355_vm1 = vcmask 138240   ;;  %s1438_s7 = smov 110   ;;  %s1439_s15 = smov 111   ;;  %v1442_v12 = vmov 0.0  }
  0x52   : > { %s1440_s11 = smov 126   ;;  %s1441_s17 = smov 112   ;;  %505 = vmatprep.mubr.f32.mxu0 %v1442_v12  ;;  %578 = vmatprep.mubr.f32.mxu1 %v1442_v12  ;;  %v699_v13 = vld [vmem:[%s1943_s4] sm:$0xf]  ;;  %v1447_v14 = vmov 0   ;;  %v307_v17 = vand.u32 127, %v306_v15 }
  0x53   : > { %v346_v4 = vsel %vm345_vm0, %v1649_v0, %v343_v2  ;;  %v347_v5 = vsel %vm345_vm0, %v1653_v3, %v338_v1  ;;  %s1443_s20 = smov 127   ;;  %s1444_s13 = smov 94   ;;  %1305 = vset.pattern.permute.xlu0 %v1447_v14  ;;  %vm417_vm3 = vcmask 900096   ;;  %vm430_vm5 = vcmask 908288  }
  0x54   : > { %351 = vrot.lane.b32.xlu0 %v346_v4, %s1436_s14  ;;  %s1445_s12 = smov 95   ;;  %s1446_s19 = smov 96   ;;  %v308_v18 = vadd.s32 128, %v307_v17  ;;  %v313_v23 = vand.u32 15, %v307_v17  ;;  %vm380_vm6 = vcmask 1031168   ;;  %vm404_vm7 = vcmask 916480  }
  0x55   : > { %s1448_s28 = smov 80   ;;  %vm438_vm10 = vcmask 195584   ;;  %vm393_vm11 = vcmask 1039360   ;;  %vm604_vm12 = vcmask 769024   ;;  %vm617_vm13 = vcmask 777216   ;;  %p1968_p3 = scmp.ne.s32.totalorder %s1951_s9, 0 }
  0x56   : > { %v320_v20 = vand.u32 15, %v308_v18  ;;  %vm1725_vm4 = vcmp.ne.s32.totalorder %v313_v23, 15  ;;  %vm1750_vm9 = vcmp.ne.s32.totalorder %v313_v23, 0  ;;  %vm591_vm14 = vcmask 785408   ;;  %v1789_v4 = vld [vmem:[%s1942_s3] sm:$0xf] }
  0x57   : > { %vm792_vm15 = vcmask 97280   ;;  %s1450_s26 = smov [#allocation7]  }
  0x58   : > { %353 = vrot.lane.b32.xlu0 %v347_v5, %s1436_s14  ;;  %vm1721_vm2 = vcmp.ne.s32.totalorder %v320_v20, 15  ;;  %vm1743_vm8 = vcmp.ne.s32.totalorder %v320_v20, 0  ;;  %s1368_s8 = sshll.u32 %s1450_s26, 4  ;;  %s1369_s8 = int_to_ptr.vmem [resolvable:$false] %s1368_s8 }
  0x5c   : > { %436 = vrot.lane.b32.xlu0 %v1664_v6, %s1437_s16 }
  0xc6   : > { %v352_v7 = vpop.permute.xlu0 %351 }
  0xc7   : > { %v1669_v8 = vsel %vm355_vm1, 0.0, %v352_v7 }
  0xc8   : > { %411 = vrot.lane.b32.xlu0 %v1669_v8, %s1438_s7 }
  0xca   : > { %v354_v9 = vpop.permute.xlu0 %353 }
  0xcb   : > { %v1674_v10 = vsel %vm355_vm1, %v352_v7, %v354_v9  ;;  %v361_v11 = vsel %vm355_vm1, %v354_v9, 0.0 }
  0xcc   : > { %428 = vrot.lane.b32.xlu0 %v361_v11, %s1439_s15  ;;  %413 = vrot.lane.b32.xlu1 %v1674_v10, %s1438_s7 }
  0xce   : > { %v437_v16 = vpop.permute.xlu0 %436 }
  0xd0   : > { %376 = vrot.lane.b32.xlu0 %v1674_v10, %s1440_s11  ;;  %415 = vrot.lane.b32.xlu1 %v361_v11, %s1438_s7 }
  0xd4   : > { %400 = vrot.lane.b32.xlu0 %v1674_v10, %s1441_s17  ;;  %426 = vrot.lane.b32.xlu1 %v1674_v10, %s1439_s15 }
  0xd8   : > { %374 = vrot.lane.b32.xlu0 %v1669_v8, %s1440_s11  ;;  %424 = vrot.lane.b32.xlu1 %v1669_v8, %s1439_s15 }
  0xdc   : > { %389 = vrot.lane.b32.xlu0 %v1674_v10, %s1443_s20  ;;  %378 = vrot.lane.b32.xlu1 %v361_v11, %s1440_s11 }
  0xe0   : > { %600 = vrot.lane.b32.xlu0 %v1674_v10, %s1444_s13  ;;  %402 = vrot.lane.b32.xlu1 %v361_v11, %s1441_s17 }
  0xe4   : > { %387 = vrot.lane.b32.xlu0 %v1669_v8, %s1443_s20  ;;  %398 = vrot.lane.b32.xlu1 %v1669_v8, %s1441_s17 }
  0xe8   : > { %615 = vrot.lane.b32.xlu0 %v361_v11, %s1445_s12  ;;  %391 = vrot.lane.b32.xlu1 %v361_v11, %s1443_s20 }
  0xec   : > { %587 = vrot.lane.b32.xlu0 %v1674_v10, %s1446_s19  ;;  %602 = vrot.lane.b32.xlu1 %v361_v11, %s1444_s13 }
  0xf0   : > { %585 = vrot.lane.b32.xlu0 %v1669_v8, %s1446_s19  ;;  %598 = vrot.lane.b32.xlu1 %v1669_v8, %s1444_s13 }
  0xf4   : > { %613 = vrot.lane.b32.xlu1 %v1674_v10, %s1445_s12  ;;  %702 = vperm.xlu0 %1305, %v699_v13  }
  0xf8   : > { %611 = vrot.lane.b32.xlu1 %v1669_v8, %s1445_s12 }
  0xfc   : > { %589 = vrot.lane.b32.xlu1 %v361_v11, %s1446_s19 }
 0x100   : > { %622 = vrot.lane.b32.xlu1 %v1664_v6, %s1448_s28  ;;  %s1449_s28 = smov 116  }
 0x101   : > { %790 = vrot.lane.b32.xlu0 %v1789_v4, %s1449_s28 }
 0x13a   : > { %v412_v19 = vpop.permute.xlu0 %411 }
 0x13e   : > { %v414_v21 = vpop.permute.xlu1 %413  ;;  %v429_v22 = vpop.permute.xlu0 %428 }
 0x13f   : > { %v418_v29 = vsel %vm417_vm3, %v412_v19, %v414_v21 }
 0x142   : > { %v416_v25 = vpop.permute.xlu1 %415  ;;  %v377_v26 = vpop.permute.xlu0 %376 }
 0x143   : > { %v419_v28 = vsel %vm417_vm3, %v414_v21, %v416_v25 }
 0x144   : > { %1208 = vmatprep.subr.msk.mxu0 %vm1721_vm2, %v419_v28 }
 0x145   : > { %1209 = vmatpush1.msk.msra.mxu0 %vm1725_vm4, %v418_v29 }
 0x146   : > { %v427_v30 = vpop.permute.xlu1 %426  ;;  %v401_v31 = vpop.permute.xlu0 %400 }
 0x147   : > { %v432_v32 = vsel %vm430_vm5, %v427_v30, %v429_v22 }
 0x148   : > { %469 = vmatprep.subr.mxu0 %v432_v32 }
 0x14a   : > { %v425_v33 = vpop.permute.xlu1 %424  ;;  %v375_v34 = vpop.permute.xlu0 %374 }
 0x14b   : > { %v431_v35 = vsel %vm430_vm5, %v425_v33, %v427_v30  ;;  %v381_v39 = vsel %vm380_vm6, %v375_v34, %v377_v26 }
 0x14c   : > { %470 = vmatpush1.msra.mxu0 %v431_v35 }
 0x14e   : > { %v379_v36 = vpop.permute.xlu1 %378  ;;  %v390_v37 = vpop.permute.xlu0 %389 }
 0x14f   : > { %v382_v38 = vsel %vm380_vm6, %v377_v26, %v379_v36 }
 0x150   : > { %1213 = vmatprep.subr.msk.mxu1 %vm1721_vm2, %v382_v38 }
 0x151   : > { %1214 = vmatpush1.msk.msra.mxu1 %vm1725_vm4, %v381_v39 }
 0x152   : > { %v403_v41 = vpop.permute.xlu1 %402  ;;  %v601_v43 = vpop.permute.xlu0 %600 }
 0x153   : > { %v406_v42 = vsel %vm404_vm7, %v401_v31, %v403_v41 }
 0x154   : > { %1210 = vmatprep.subr.msk.mxu0 %vm1743_vm8, %v406_v42 }
 0x156   : > { %v399_v45 = vpop.permute.xlu1 %398  ;;  %v388_v47 = vpop.permute.xlu0 %387 }
 0x157   : > { %v405_v46 = vsel %vm404_vm7, %v399_v45, %v401_v31  ;;  %v394_v50 = vsel %vm393_vm11, %v388_v47, %v390_v37  ;;  %v1070_v31 = vld [vmem:[%s1944_s5] sm:$0xf] }
 0x158   : > { %1211 = vmatpush1.msk.msra.mxu0 %vm1750_vm9, %v405_v46 }
 0x159   : > { %1212 = vmatmul.mubr.msk.f32.vlgmr.msra.gmra.mxu0 %vm438_vm10, %v437_v16 }
 0x15a   : > { %v392_v48 = vpop.permute.xlu1 %391  ;;  %690 = vmatprep.mubr.f32.mxu0 %v1442_v12  ;;  %v616_v53 = vpop.permute.xlu0 %615 }
 0x15b   : > { %v395_v49 = vsel %vm393_vm11, %v390_v37, %v392_v48 }
 0x15c   : > { %542 = vmatprep.subr.mxu1 %v395_v49 }
 0x15d   : > { %543 = vmatpush1.msra.mxu1 %v394_v50 }
 0x15e   : > { %v603_v51 = vpop.permute.xlu1 %602  ;;  %1215 = vmatprep.subr.msk.mxu1 %vm1743_vm8, %v1674_v10  ;;  %v588_v57 = vpop.permute.xlu0 %587 }
 0x15f   : > { %v606_v52 = vsel %vm604_vm12, %v601_v43, %v603_v51  ;;  %1216 = vmatpush1.msk.msra.mxu1 %vm1750_vm9, %v1669_v8 }
 0x160   : > { %1217 = vmatmul.mubr.msk.f32.vlgmr.msra.gmra.mxu1 %vm438_vm10, %v1664_v6  ;;  %1218 = vmatprep.subr.msk.mxu0 %vm1721_vm2, %v606_v52 }
 0x161   : > { %865 = vmatprep.mubr.f32.mxu1 %v1442_v12 }
 0x162   : > { %v599_v54 = vpop.permute.xlu1 %598  ;;  %v586_v61 = vpop.permute.xlu0 %585 }
 0x163   : > { %v605_v55 = vsel %vm604_vm12, %v599_v54, %v601_v43  ;;  %v592_v1 = vsel %vm591_vm14, %v586_v61, %v588_v57 }
 0x164   : > { %1219 = vmatpush1.msk.msra.mxu0 %vm1725_vm4, %v605_v55 }
 0x166   : > { %v614_v56 = vpop.permute.xlu1 %613 }
 0x167   : > { %v619_v58 = vsel %vm617_vm13, %v614_v56, %v616_v53 }
 0x168   : > { %654 = vmatprep.subr.mxu0 %v619_v58 }
 0x16a   : > { %v612_v59 = vpop.permute.xlu1 %611 }
 0x16b   : > { %v618_v60 = vsel %vm617_vm13, %v612_v59, %v614_v56 }
 0x16c   : > { %655 = vmatpush1.msra.mxu0 %v618_v60 }
 0x16e   : > { %v590_v62 = vpop.permute.xlu1 %589 }
 0x16f   : > { %v593_v63 = vsel %vm591_vm14, %v588_v57, %v590_v62  ;;  %v703_v11 = vpop.permute.xlu0 %702 }
 0x170   : > { %1220 = vmatprep.subr.msk.mxu0 %vm1743_vm8, %v593_v63 }
 0x171   : > { %1221 = vmatpush1.msk.msra.mxu0 %vm1750_vm9, %v592_v1 }
 0x172   : > { %v623_v2 = vpop.permute.xlu1 %622 }
 0x173   : > { %1222 = vmatmul.mubr.msk.f32.vlgmr.msra.gmra.mxu0 %vm438_vm10, %v623_v2  ;;  %v791_v32 = vpop.permute.xlu0 %790 }
 0x174   : > { %1061 = vmatprep.mubr.f32.mxu0 %v1442_v12 }
 0x219   : > { %v507_v5 = vpop.f32.mrf.mxu0 }
 0x21b   : > { %v509_v7 = vpop.f32.mrf.mxu0 }
 0x220   : > { %v580_v6 = vpop.f32.mrf.mxu1 }
 0x221   : > { %v581_v9 = vadd.f32 %v580_v6, %v507_v5 }
 0x222   : > { %v582_v8 = vpop.f32.mrf.mxu1 }
 0x223   : > { %v583_v13 = vadd.f32 %v582_v8, %v509_v7 }
 0x233   : > { %v692_v10 = vpop.f32.mrf.mxu0 }
 0x234   : > { %v697_v14 = vadd.f32 %v692_v10, %v581_v9 }
 0x235   : > { %v694_v15 = vpop.f32.mrf.mxu0 }
 0x236   : > { %v698_v16 = vadd.f32 %v694_v15, %v583_v13  ;;  %v705_v17 = vadd.f32 %v703_v11, %v697_v14 }
 0x238   : > { %v706_v18 = vadd.f32 %v703_v11, %v698_v16  ;;  %v707_v19 = vmax.f32 %v705_v17, 0.0 }
 0x23a   : > { %712 = vrot.lane.b32.xlu1 %v707_v19, %s1436_s14  ;;  %v708_v20 = vmax.f32 %v706_v18, 0.0 }
 0x23e   : > { %714 = vrot.lane.b32.xlu1 %v708_v20, %s1436_s14 }
 0x2ac   : > { %v713_v21 = vpop.permute.xlu1 %712 }
 0x2ad   : > { %v1795_v22 = vsel %vm355_vm1, 0.0, %v713_v21 }
 0x2ae   : > { %753 = vrot.lane.b32.xlu1 %v1795_v22, %s1441_s17  ;;  %765 = vrot.lane.b32.xlu0 %v1795_v22, %s1438_s7  ;;  %v738_v28 = vrot.slane %v1795_v22, 4  ;;  %v722_v27 = vsel %vm1750_vm9, %v1795_v22, 0.0 }
 0x2b0   : > { %v715_v23 = vpop.permute.xlu1 %714 }
 0x2b1   : > { %v1806_v25 = vsel %vm355_vm1, %v713_v21, %v715_v23  ;;  %v721_v26 = vsel %vm355_vm1, %v715_v23, 0.0 }
 0x2b2   : > { %726 = vrot.lane.b32.xlu1 %v1795_v22, %s1440_s11  ;;  %963 = vrot.lane.b32.xlu0 %v1795_v22, %s1444_s13  ;;  %v739_v29 = vrot.slane %v1806_v25, 4  ;;  %v740_v30 = vrot.slane %v721_v26, 4  ;;  %v723_v19 = vsel %vm1743_vm8, %v1806_v25, 0.0 }
 0x2b6   : > { %951 = vrot.lane.b32.xlu1 %v1795_v22, %s1446_s19  ;;  %767 = vrot.lane.b32.xlu0 %v1806_v25, %s1438_s7 }
 0x2ba   : > { %769 = vrot.lane.b32.xlu1 %v721_v26, %s1438_s7  ;;  %755 = vrot.lane.b32.xlu0 %v1806_v25, %s1441_s17 }
 0x2be   : > { %757 = vrot.lane.b32.xlu1 %v721_v26, %s1441_s17  ;;  %777 = vrot.lane.b32.xlu0 %v738_v28, %s1439_s15 }
 0x2c2   : > { %728 = vrot.lane.b32.xlu1 %v1806_v25, %s1440_s11  ;;  %730 = vrot.lane.b32.xlu0 %v721_v26, %s1440_s11 }
 0x2c6   : > { %965 = vrot.lane.b32.xlu1 %v1806_v25, %s1444_s13  ;;  %967 = vrot.lane.b32.xlu0 %v721_v26, %s1444_s13 }
 0x2ca   : > { %741 = vrot.lane.b32.xlu1 %v738_v28, %s1443_s20  ;;  %953 = vrot.lane.b32.xlu0 %v1806_v25, %s1446_s19 }
 0x2ce   : > { %955 = vrot.lane.b32.xlu1 %v721_v26, %s1446_s19  ;;  %779 = vrot.lane.b32.xlu0 %v739_v29, %s1439_s15 }
 0x2d2   : > { %781 = vrot.lane.b32.xlu1 %v740_v30, %s1439_s15  ;;  %743 = vrot.lane.b32.xlu0 %v739_v29, %s1443_s20  ;;  %s305_s15 = scalar_lea.vmem [#allocation7], %s1635_s29 }
 0x2d3   : > { %s1102_s11 = sshll.u32 %s305_s15, 4  ;;  %s1103_s11 = int_to_ptr.vmem [resolvable:$true] %s1102_s11 }
 0x2d4   : > { %s1364_s19 = scalar_lea.vmem %s1103_s11, 128  ;;  %p1371_p10 = scmp.lt.s32.totalorder %s1103_s11, %s1369_s8 }
 0x2d5   : > { %p1365_p13 = scmp.ne.s32.totalorder %s1103_s11, %s1364_s19 }
 0x2d6   : > { %745 = vrot.lane.b32.xlu1 %v740_v30, %s1443_s20  ;;  %977 = vrot.lane.b32.xlu0 %v739_v29, %s1445_s12 }
 0x2d7   : > { %p1366_p7 = pnand %p1365_p13, %p1968_p3 }
 0x2d9   : > { %p1367_p8 = pneg %p1366_p7 }
 0x2da   : > { %979 = vrot.lane.b32.xlu1 %v740_v30, %s1445_s12  ;;  %975 = vrot.lane.b32.xlu0 %v738_v28, %s1445_s12  ;;  %s1088_s12 = scalar_lea.sflag [#allocation4], %s1632_s18 }
 0x2de   : > { %987 = vrot.lane.b32.xlu1 %v1789_v4, %s1437_s16  ;;  %1073 = vperm.xlu0 %1305, %v1070_v31   ;;  %s1239_s16 = sshll.u32 %s1507_s25, 7  ;;  %s1370_s25 = scalar_lea.vmem %s1369_s8, 256 }
 0x2df   : > { %s1100_s13 = scalar_lea.hbm %s1945_s6, %s1239_s16  ;;  %p1372_p2 = scmp.lt.s32.totalorder %s1370_s25, %s1364_s19 }
 0x2e1   : > { %p1373_p4 = por %p1372_p2, %p1371_p10 }
 0x2e3   : > { %p1374_p5 = pnand %p1373_p4, %p1367_p8 }
 0x320   : > { %v754_v33 = vpop.permute.xlu1 %753  ;;  %v766_v34 = vpop.permute.xlu0 %765 }
 0x324   : > { %v727_v35 = vpop.permute.xlu1 %726  ;;  %v964_v36 = vpop.permute.xlu0 %963 }
 0x328   : > { %v952_v37 = vpop.permute.xlu1 %951  ;;  %v768_v38 = vpop.permute.xlu0 %767 }
 0x329   : > { %v771_v39 = vsel %vm417_vm3, %v766_v34, %v768_v38 }
 0x32a   : > { %v775_v46 = vsel %vm1725_vm4, %v771_v39, 0.0 }
 0x32c   : > { %v770_v41 = vpop.permute.xlu1 %769  ;;  %v756_v42 = vpop.permute.xlu0 %755 }
 0x32d   : > { %v772_v43 = vsel %vm417_vm3, %v768_v38, %v770_v41  ;;  %v759_v62 = vsel %vm404_vm7, %v754_v33, %v756_v42 }
 0x32e   : > { %v776_v45 = vsel %vm1721_vm2, %v772_v43, 0.0  ;;  %v763_v8 = vsel %vm1750_vm9, %v759_v62, 0.0 }
 0x32f   : > { %1223 = vmatprep.subr.msk.mxu1 %vm345_vm0, %v776_v45 }
 0x330   : > { %v758_v47 = vpop.permute.xlu1 %757  ;;  %1224 = vmatpush1.msk.msra.mxu1 %vm345_vm0, %v775_v46  ;;  %v778_v48 = vpop.permute.xlu0 %777 }
 0x331   : > { %v760_v61 = vsel %vm404_vm7, %v756_v42, %v758_v47 }
 0x332   : > { %v764_v5 = vsel %vm1743_vm8, %v760_v61, 0.0 }
 0x334   : > { %v729_v49 = vpop.permute.xlu1 %728  ;;  %v731_v50 = vpop.permute.xlu0 %730 }
 0x335   : > { %v733_v6 = vsel %vm380_vm6, %v729_v49, %v731_v50  ;;  %v732_v9 = vsel %vm380_vm6, %v727_v35, %v729_v49 }
 0x336   : > { %v737_v13 = vsel %vm1721_vm2, %v733_v6, 0.0  ;;  %v736_v17 = vsel %vm1725_vm4, %v732_v9, 0.0 }
 0x338   : > { %v966_v51 = vpop.permute.xlu1 %965  ;;  %v968_v52 = vpop.permute.xlu0 %967 }
 0x339   : > { %v969_v53 = vsel %vm604_vm12, %v964_v36, %v966_v51  ;;  %v970_v54 = vsel %vm604_vm12, %v966_v51, %v968_v52 }
 0x33a   : > { %v973_v55 = vsel %vm1725_vm4, %v969_v53, 0.0  ;;  %v974_v56 = vsel %vm1721_vm2, %v970_v54, 0.0 }
 0x33b   : > { %1229 = vmatprep.subr.msk.mxu0 %vm345_vm0, %v974_v56 }
 0x33c   : > { %v742_v57 = vpop.permute.xlu1 %741  ;;  %1230 = vmatpush1.msk.msra.mxu0 %vm345_vm0, %v973_v55  ;;  %v954_v58 = vpop.permute.xlu0 %953 }
 0x33d   : > { %v957_v24 = vsel %vm591_vm14, %v952_v37, %v954_v58 }
 0x33e   : > { %v961_v28 = vsel %vm1750_vm9, %v957_v24, 0.0 }
 0x340   : > { %v956_v59 = vpop.permute.xlu1 %955  ;;  %v780_v60 = vpop.permute.xlu0 %779 }
 0x341   : > { %v783_v63 = vsel %vm430_vm5, %v778_v48, %v780_v60  ;;  %v958_v20 = vsel %vm591_vm14, %v954_v58, %v956_v59 }
 0x342   : > { %v787_v11 = vsel %vm345_vm0, %v763_v8, %v783_v63  ;;  %v962_v29 = vsel %vm1743_vm8, %v958_v20, 0.0 }
 0x344   : > { %v782_v1 = vpop.permute.xlu1 %781  ;;  %v744_v2 = vpop.permute.xlu0 %743 }
 0x345   : > { %v784_v7 = vsel %vm430_vm5, %v780_v60, %v782_v1  ;;  %v747_v14 = vsel %vm393_vm11, %v742_v57, %v744_v2 }
 0x346   : > { %v788_v10 = vsel %vm345_vm0, %v764_v5, %v784_v7  ;;  %v751_v23 = vsel %vm345_vm0, %v722_v27, %v747_v14 }
 0x347   : > { %831 = vmatprep.subr.mxu1 %v788_v10 }
 0x348   : > { %v746_v15 = vpop.permute.xlu1 %745  ;;  %832 = vmatpush1.msra.mxu1 %v787_v11  ;;  %v978_v16 = vpop.permute.xlu0 %977 }
 0x349   : > { %v748_v18 = vsel %vm393_vm11, %v744_v2, %v746_v15  ;;  %1225 = vmatmul.mubr.msk.f32.vlgmr.msra.gmra.mxu1 %vm792_vm15, %v791_v32  ;;  %1226 = vmatprep.subr.msk.mxu1 %vm345_vm0, %v737_v13 }
 0x34a   : > { %1227 = vmatpush1.msk.msra.mxu1 %vm345_vm0, %v736_v17  ;;  %v752_v21 = vsel %vm345_vm0, %v723_v19, %v748_v18  ;;  %944 = vmatprep.mubr.f32.mxu1 %v1442_v12 }
 0x34b   : > { %910 = vmatprep.subr.mxu1 %v752_v21 }
 0x34c   : > { %v980_v26 = vpop.permute.xlu1 %979  ;;  %911 = vmatpush1.msra.mxu1 %v751_v23  ;;  %v976_v25 = vpop.permute.xlu0 %975 }
 0x34d   : > { %v982_v30 = vsel %vm617_vm13, %v978_v16, %v980_v26  ;;  %v981_v31 = vsel %vm617_vm13, %v976_v25, %v978_v16  ;;  %1228 = vmatmul.mubr.msk.f32.vlgmr.msra.gmra.mxu1 %vm792_vm15, %v1789_v4 }
 0x34e   : > { %v986_v12 = vsel %vm345_vm0, %v962_v29, %v982_v30  ;;  %v985_v22 = vsel %vm345_vm0, %v961_v28, %v981_v31 }
 0x34f   : > { %1027 = vmatprep.subr.mxu0 %v986_v12 }
 0x350   : > { %v988_v32 = vpop.permute.xlu1 %987  ;;  %1028 = vmatpush1.msra.mxu0 %v985_v22 }
 0x351   : > { %1231 = vmatmul.mubr.msk.f32.vlgmr.msra.gmra.mxu0 %vm792_vm15, %v988_v32 }
 0x359   : > { %v1074_v4 = vpop.permute.xlu0 %1073 }
 0x409   : > { %v867_v44 = vpop.f32.mrf.mxu1 }
 0x40b   : > { %v869_v40 = vpop.f32.mrf.mxu1 }
 0x40d   : > { %v946_v33 = vpop.f32.mrf.mxu1 }
 0x40e   : > { %v947_v35 = vadd.f32 %v946_v33, %v867_v44 }
 0x40f   : > { %v948_v34 = vpop.f32.mrf.mxu1 }
 0x410   : > { %v949_v37 = vadd.f32 %v948_v34, %v869_v40 }
 0x411   : > { %v1063_v36 = vpop.f32.mrf.mxu0 }
 0x412   : > { %v1068_v38 = vadd.f32 %v1063_v36, %v947_v35 }
 0x413   : > { %v1065_v39 = vpop.f32.mrf.mxu0 }
 0x414   : > { %v1076_v41 = vadd.f32 %v1074_v4, %v1068_v38  ;;  %v1069_v42 = vadd.f32 %v1065_v39, %v949_v37 }
 0x416   : > { %v1078_v43 = vadd.f32 %v1076_v41, %v1649_v0  ;;  %v1077_v45 = vadd.f32 %v1074_v4, %v1069_v42 }
 0x418   : > { %v1079_v46 = vadd.f32 %v1077_v45, %v1653_v3  ;;  %v1080_v47 = vmax.f32 %v1078_v43, 0.0 }
 0x41a   : > { %v1081_v48 = vmax.f32 %v1079_v46, 0.0 }
 0x41c   : > { %v1084_v49 = vcombine.low %v1080_v47, %v1081_v48 }
 0x41e   : > { %1086 = vst [vmem:[%s305_s15] sm:$0xff] %v1084_v49 }
 0x41f   : > { %1377 = shalt.err (!%p1374_p5)
}
 0x420   : > { %s1378_s29 = scalar_lea.hbm %s1100_s13, 128  ;;  %s1382_s14 = scalar_lea.hbm %s1945_s6, 256 }
 0x421   : > { %p1379_p9 = scmp.ne.s32.totalorder %s1100_s13, %s1378_s29  ;;  %p1383_p12 = scmp.lt.s32.totalorder %s1100_s13, %s1945_s6 }
 0x422   : > { %p1384_p1 = scmp.lt.s32.totalorder %s1382_s14, %s1378_s29 }
 0x423   : > { %p1380_p0 = pnand %p1379_p9, %p1968_p3 }
 0x424   : > { %p1385_p6 = por %p1384_p1, %p1383_p12 }
 0x425   : > { %p1381_p11 = pneg %p1380_p0 }
 0x427   : > { %p1386_p13 = pnand %p1385_p6, %p1381_p11 }
 0x429   : > { %1389 = shalt.err (!%p1386_p13)
}
 0x42a   : > { %1244 = dma.vmem_to_hbm [thread:$0]  (%p1968_p3), %s1103_s11, 128, %s1100_s13, %s1088_s12  }
 0x42b PF: > { %s1114_s15 = sand.u32 1, %s1420_s21   ;;  %p1969_p7 = scmp.ne.s32.totalorder %s1952_s10, 0 }
 0x42c   : > { %p1970_p8 = scmp.ge.s32.totalorder %s1432_s24, 2  ;;  %s1115_s17 = scalar_lea.sflag [#allocation4], %s1114_s15 }
 0x42e   : > { %p1254_p10 = pnand %p1970_p8, %p1969_p7 }
 0x430   : > { %p1255_p2 = pneg %p1254_p10 }
 0x432   : > { %1415 = dma.done.wait (%p1255_p2), %s1115_s17, 128  }
 0x433   : > { %1417 = vsyncadd (%p1255_p2), %s1115_s17, 4294967168  ;;  %p22_p4 = scmp.ge.s32.totalorder %s1511_s27, 4   ;;  %s1971_s21 = smov %s1424_s22 }
 0x434   : > { %s1972_s22 = smov %s1428_s23  ;;  %s1973_s23 = smov %s1523_s30 }
 0x435   : > { %s1974_s24 = smov %s1511_s27  ;;  %24 = sbr.rel (!%p22_p4) target bundleno = 7 (0x7), region = 102 }
 0x43a   :  { %1120 = vsyncpa [#allocation3], 1 }
 0x43b   :  { %1122 = vsyncpa [#allocation3 + $0x1], 1 }
 0x43c   :  { %1123 = vsyncpa [#allocation6], 1 }
 0x43d   :  { %1125 = vsyncpa [#allocation6 + $0x1], 1 }
 0x43e   :  { %1126 = vsyncpa [#allocation4], 1 }
 0x43f   :  { %1128 = vsyncpa [#allocation4 + $0x1], 1 }

</bundles_post_ra>
